<compile_context>
chip_gen: v7x
topology: tpu7x:2x2x1
jax: 0.10.0
libtpu: 0.0.40
codegen_flags: <defaults>
</compile_context>

<pallas_src>
import functools

import jax
import jax.numpy as jnp
import numpy as np
from jax import lax
from jax.experimental import pallas as pl
from jax.experimental.pallas import tpu as pltpu


def _srel_kernel(phi0_ref, static_eta_ref, static_rm_ref, w_s_ref,
                 sr_ref, si_ref, *, n_step, modulus, Ls):
    """One grid step = one batch block; the full N_step recurrence runs in-kernel.

    phi0_ref       : (Bt, Ls)             initial phases
    static_eta_ref : (Bt, M, Ls)          xwy @ W_eta[2Ls:] + b_eta   (phi-independent, hoisted)
    static_rm_ref  : (Bt, M, 2)           xwy @ W_rm[2Ls:]  + b_rm    (col0 = rho, col1 = mu)
    w_s_ref        : (2Ls, Ls+2)          fused s-dependent weights [eta-head | rho | mu]
    sr_ref/si_ref  : (N_step+1, Bt, Ls)   resident output slabs (real / imag of s)
    """
    static_eta = static_eta_ref[...]                       # (Bt, M, Ls)
    static_rm = static_rm_ref[...]                         # (Bt, M, 2)
    static_rho = static_rm[:, :, 0:1]                      # (Bt, M, 1)
    static_mu = static_rm[:, :, 1:2]                       # (Bt, M, 1)
    w_s = w_s_ref[...]                                     # (2Ls, Ls+2), loaded once

    def step(t, phi):
        s_r = modulus * jnp.cos(phi)                       # (Bt, Ls)
        s_i = modulus * jnp.sin(phi)
        sr_ref[t] = s_r                                    # store into resident VMEM block
        si_ref[t] = s_i
        # Single fused s-dependent projection (replaces four separate dots of v1).
        s_proj = jnp.dot(jnp.concatenate([s_r, s_i], axis=-1), w_s,
                         preferred_element_type=jnp.float32)      # (Bt, Ls+2)
        s_eta = s_proj[:, :Ls]                             # (Bt, Ls)
        s_rho = s_proj[:, Ls:Ls + 1]                       # (Bt, 1)
        s_mu = s_proj[:, Ls + 1:Ls + 2]                    # (Bt, 1)
        coeff = ((static_rho + s_rho[:, None, :])
                 * (static_mu + s_mu[:, None, :]))         # (Bt, M, 1) = rho_m * mu_m
        # eta_net = sum_m coeff_m * (s_eta + static_eta_m); the shared s_eta term is scaled by
        # sum_m coeff_m instead of being broadcast to a (Bt, M, Ls) intermediate.
        eta_net = (jnp.sum(coeff, axis=1) * s_eta
                   + jnp.sum(coeff * static_eta, axis=1))  # (Bt, Ls)
        return phi - eta_net

    phi = lax.fori_loop(0, n_step, step, phi0_ref[...], unroll=n_step <= 8)
    # final s at t == N_step
    sr_ref[n_step] = modulus * jnp.cos(phi)
    si_ref[n_step] = modulus * jnp.sin(phi)


def _pick_batch_tile(B, M, Ls, n_step):
    """Largest sublane-aligned batch tile that divides B, fits a conservative VMEM budget and
    (preferably) leaves >=2 grid points so v7x's two TensorCores both get work."""
    def footprint_bytes(bt):
        resident = (bt * Ls                        # phi0 block
                    + bt * M * (Ls + 2)            # hoisted static projections
                    + 2 * (n_step + 1) * bt * Ls)  # output slabs (real + imag)
        weights = 2 * Ls * (Ls + 2)
        return (resident + weights) * 4 * 2        # f32, x2 for double buffering

    budget = 8 * 1024 * 1024                       # well inside v7x's 64 MiB VMEM / 32 MiB scoped
    for prefer_split in (True, False):
        for bt in (256, 128, 64, 32, 16, 8):
            if B % bt == 0 and footprint_bytes(bt) <= budget and (B // bt >= 2 or not prefer_split):
                return bt
    return B                                       # tiny B: whole batch in one block


def srel_rep_mu_forward(phi0_batch, w_M_batch, y_M, params, *, n_step, modulus):
    B, Ls = phi0_batch.shape
    Lw, M = w_M_batch.shape[1], w_M_batch.shape[2]
    Ly = y_M.shape[0]

    W_eta, b_eta, W_rm, b_rm = params              # (D, Ls), (Ls,), (D, 2), (2,)

    # ---- host-side glue (all phi-independent, computed once) -------------------------------
    # per-radar-m static feature matrix [w.real | w.imag | y]  -> (B, M, Dw)
    w_r = jnp.transpose(jnp.real(w_M_batch), (0, 2, 1)).astype(jnp.float32)
    w_i = jnp.transpose(jnp.imag(w_M_batch), (0, 2, 1)).astype(jnp.float32)
    y_t = jnp.broadcast_to(jnp.transpose(y_M, (1, 0))[None].astype(jnp.float32), (B, M, Ly))
    xwy = jnp.concatenate([w_r, w_i, y_t], axis=-1)                         # (B, M, 2*Lw+Ly)

    # fused [eta | rho | mu] heads: columns 0..Ls-1 = eta, Ls = rho, Ls+1 = mu
    W_cat = jnp.concatenate([W_eta, W_rm], axis=1).astype(jnp.float32)      # (D, Ls+2)
    b_cat = jnp.concatenate([b_eta, b_rm], axis=0).astype(jnp.float32)      # (Ls+2,)
    W_s = W_cat[: 2 * Ls]                                                   # (2Ls, Ls+2)
    W_wy = W_cat[2 * Ls:]                                                   # (Dw, Ls+2)

    # Hoisted loop-invariant projection (never depends on phi or the step index): fold the
    # [w, y] rows of every sub-net plus the biases once, outside the recurrence.
    static = jnp.einsum('bmd,de->bme', xwy, W_wy) + b_cat                   # (B, M, Ls+2)
    static_eta = static[..., :Ls]                                           # (B, M, Ls)
    static_rm = static[..., Ls:]                                            # (B, M, 2)

    Bt = _pick_batch_tile(B, M, Ls, n_step)
    nb = B // Bt

    kernel = functools.partial(_srel_kernel, n_step=n_step, modulus=float(modulus), Ls=Ls)

    sr, si = pl.pallas_call(
        kernel,
        out_shape=(jax.ShapeDtypeStruct((n_step + 1, B, Ls), jnp.float32),
                   jax.ShapeDtypeStruct((n_step + 1, B, Ls), jnp.float32)),
        grid=(nb,),
        in_specs=[
            pl.BlockSpec((Bt, Ls), lambda b: (b, 0)),
            pl.BlockSpec((Bt, M, Ls), lambda b: (b, 0, 0)),
            pl.BlockSpec((Bt, M, 2), lambda b: (b, 0, 0)),
            pl.BlockSpec((2 * Ls, Ls + 2), lambda b: (0, 0)),
        ],
        out_specs=(
            pl.BlockSpec((n_step + 1, Bt, Ls), lambda b: (0, b, 0)),
            pl.BlockSpec((n_step + 1, Bt, Ls), lambda b: (0, b, 0)),
        ),
        compiler_params=pltpu.CompilerParams(
            dimension_semantics=("parallel",)),
    )(phi0_batch.astype(jnp.float32), static_eta, static_rm, W_s)

    # (N_step+1, B, Ls) -> (B, N_step+1, Ls), combine to complex64 (PyTorch output dtype).
    s_stack_batch = jnp.transpose(sr + 1j * si, (1, 0, 2)).astype(jnp.complex64)
    # mu_stack_batch is allocated but never written in the reference forward -> stays zero.
    mu_stack_batch = jnp.zeros((B, n_step, M), jnp.float32)
    return {'s_stack_batch': s_stack_batch, 'mu_stack_batch': mu_stack_batch}


def ref_forward(phi0_batch, w_M_batch, y_M, params, *, n_step, modulus):
    """Pure-numpy mirror of the PyTorch loop (single-linear sub-nets)."""
    W_eta, b_eta, W_rm, b_rm = [np.asarray(p, np.float32) for p in params]
    phi0 = np.asarray(phi0_batch, np.float32)
    wM = np.asarray(w_M_batch)
    yM = np.asarray(y_M, np.float32)
    B, Ls = phi0.shape
    M = yM.shape[1]
    s_stack = np.zeros((B, n_step + 1, Ls), dtype=np.complex64)
    for b in range(B):
        phi = phi0[b].copy()
        for t in range(n_step):
            s = modulus * np.exp(1j * phi)
            s_stack[b, t] = s
            eta_net = np.zeros(Ls, np.float32)
            for m in range(M):
                w = wM[b, :, m]
                y = yM[:, m]
                x = np.concatenate([s.real, s.imag, w.real, w.imag, y]).astype(np.float32)
                eta = x @ W_eta + b_eta
                rho = x @ W_rm[:, 0] + b_rm[0]
                mu = x @ W_rm[:, 1] + b_rm[1]
                eta_net += mu * rho * eta
            phi = phi - eta_net
        s_stack[b, n_step] = modulus * np.exp(1j * phi)
    return s_stack


if __name__ == "__main__":
    # constants: M, Nt, N, N_step, modulus, Lw, Ly
    B, Nt, N, Lw, Ly, M, N_step = 2, 2, 4, 8, 8, 4, 3
    Ls = Nt * N
    modulus = 1.0
    D = 2 * Ls + 2 * Lw + Ly

    key = jax.random.PRNGKey(0)
    keys = jax.random.split(key, 8)
    phi0_batch = jax.random.uniform(keys[0], (B, Ls), jnp.float32, -jnp.pi, jnp.pi)
    w_M_batch = (jax.random.normal(keys[1], (B, Lw, M), jnp.float32)
                 + 1j * jax.random.normal(keys[2], (B, Lw, M), jnp.float32)).astype(jnp.complex64)
    y_M = jax.random.normal(keys[3], (Ly, M), jnp.float32)

    # deterministic "weights" for the (assumed-linear) eta / rho / mu sub-nets
    W_eta = 0.05 * jax.random.normal(keys[4], (D, Ls), jnp.float32)
    b_eta = 0.05 * jax.random.normal(keys[5], (Ls,), jnp.float32)
    W_rm = 0.05 * jax.random.normal(keys[6], (D, 2), jnp.float32)   # col0 = rho, col1 = mu
    b_rm = 0.05 * jax.random.normal(keys[7], (2,), jnp.float32)
    params = (W_eta, b_eta, W_rm, b_rm)

    out = srel_rep_mu_forward(phi0_batch, w_M_batch, y_M, params,
                              n_step=N_step, modulus=modulus)
    jax.block_until_ready(out)

    s_ref = ref_forward(phi0_batch, w_M_batch, y_M, params,
                        n_step=N_step, modulus=modulus)
    np.testing.assert_allclose(np.asarray(out['s_stack_batch']), s_ref,
                               rtol=2e-3, atol=2e-4)
    assert out['mu_stack_batch'].shape == (B, N_step, M)
    print("KERNEL_OK")
</pallas_src>

<mosaic_0001>
module attributes {stable_mosaic.version = 11 : i64} {
  func.func @_srel_kernel(%arg0: i32, %arg1: memref<2x8xf32, #tpu.memory_space<vmem>>, %arg2: memref<2x4x8xf32, #tpu.memory_space<vmem>>, %arg3: memref<2x4x2xf32, #tpu.memory_space<vmem>>, %arg4: memref<16x10xf32, #tpu.memory_space<vmem>>, %arg5: memref<4x2x8xf32, #tpu.memory_space<vmem>>, %arg6: memref<4x2x8xf32, #tpu.memory_space<vmem>>) attributes {dimension_semantics = [#tpu.dimension_semantics<parallel>], iteration_bounds = array<i64: 1>, scalar_prefetch = 0 : i64, scratch_operands = 0 : i64, tpu.core_type = #tpu.core_type<tc>, window_params = [{transform_indices = @transform_0, window_bounds = array<i64: 2, 8>}, {transform_indices = @transform_1, window_bounds = array<i64: 2, 4, 8>}, {transform_indices = @transform_2, window_bounds = array<i64: 2, 4, 2>}, {pipeline_mode = #tpu.pipeline_mode<synchronous>, transform_indices = @transform_3, window_bounds = array<i64: 16, 10>}, {transform_indices = @transform_4, window_bounds = array<i64: 4, 2, 8>}, {transform_indices = @transform_5, window_bounds = array<i64: 4, 2, 8>}]} {
    %c0 = arith.constant 0 : index
    %c0_0 = arith.constant 0 : index
    %c0_1 = arith.constant 0 : index
    %0 = vector.load %arg2[%c0, %c0_0, %c0_1] : memref<2x4x8xf32, #tpu.memory_space<vmem>>, vector<2x4x8xf32>
    %c0_2 = arith.constant 0 : index
    %c0_3 = arith.constant 0 : index
    %c0_4 = arith.constant 0 : index
    %1 = vector.load %arg3[%c0_2, %c0_3, %c0_4] : memref<2x4x2xf32, #tpu.memory_space<vmem>>, vector<2x4x2xf32>
    %2 = vector.extract_strided_slice %1 {offsets = [0, 0, 0], sizes = [2, 4, 1], strides = [1, 1, 1]} : vector<2x4x2xf32> to vector<2x4x1xf32>
    %3 = vector.extract_strided_slice %1 {offsets = [0, 0, 1], sizes = [2, 4, 1], strides = [1, 1, 1]} : vector<2x4x2xf32> to vector<2x4x1xf32>
    %c0_5 = arith.constant 0 : index
    %c0_6 = arith.constant 0 : index
    %4 = vector.load %arg4[%c0_5, %c0_6] : memref<16x10xf32, #tpu.memory_space<vmem>>, vector<16x10xf32>
    %c0_7 = arith.constant 0 : index
    %c0_8 = arith.constant 0 : index
    %5 = vector.load %arg1[%c0_7, %c0_8] : memref<2x8xf32, #tpu.memory_space<vmem>>, vector<2x8xf32>
    %c0_i32 = arith.constant 0 : i32
    %6 = math.cos %5 : vector<2x8xf32>
    %cst = arith.constant 1.000000e+00 : f32
    %7 = vector.broadcast %cst : f32 to vector<2x8xf32>
    %8 = arith.mulf %7, %6 : vector<2x8xf32>
    %9 = math.sin %5 : vector<2x8xf32>
    %cst_9 = arith.constant 1.000000e+00 : f32
    %10 = vector.broadcast %cst_9 : f32 to vector<2x8xf32>
    %11 = arith.mulf %10, %9 : vector<2x8xf32>
    %12 = arith.index_cast %c0_i32 : i32 to index
    %c0_10 = arith.constant 0 : index
    %c0_11 = arith.constant 0 : index
    %13 = vector.load %arg5[%12, %c0_10, %c0_11] : memref<4x2x8xf32, #tpu.memory_space<vmem>>, vector<1x2x8xf32>
    %14 = vector.shape_cast %13 : vector<1x2x8xf32> to vector<2x8xf32>
    %15 = vector.shape_cast %8 : vector<2x8xf32> to vector<1x2x8xf32>
    tpu.vector_store %arg5[%12, %c0_10, %c0_11], %15 {strides = array<i32>} : memref<4x2x8xf32, #tpu.memory_space<vmem>>, vector<1x2x8xf32>,
    %16 = arith.index_cast %c0_i32 : i32 to index
    %c0_12 = arith.constant 0 : index
    %c0_13 = arith.constant 0 : index
    %17 = vector.load %arg6[%16, %c0_12, %c0_13] : memref<4x2x8xf32, #tpu.memory_space<vmem>>, vector<1x2x8xf32>
    %18 = vector.shape_cast %17 : vector<1x2x8xf32> to vector<2x8xf32>
    %19 = vector.shape_cast %11 : vector<2x8xf32> to vector<1x2x8xf32>
    tpu.vector_store %arg6[%16, %c0_12, %c0_13], %19 {strides = array<i32>} : memref<4x2x8xf32, #tpu.memory_space<vmem>>, vector<1x2x8xf32>,
    %20 = tpu.concatenate %8, %11 in 1 : vector<2x8xf32>, vector<2x8xf32> -> vector<2x16xf32>
    %cst_14 = arith.constant dense<0.000000e+00> : vector<2x10xf32>
    %21 = tpu.matmul %20, %4, %cst_14 {dimension_numbers = #tpu.dot_dimension_numbers<[1], [0], [0], [1], [0, 0, 1, 1], [], []>} : vector<2x16xf32>, vector<16x10xf32>, vector<2x10xf32> -> vector<2x10xf32>
    %22 = vector.extract_strided_slice %21 {offsets = [0, 0], sizes = [2, 8], strides = [1, 1]} : vector<2x10xf32> to vector<2x8xf32>
    %23 = vector.extract_strided_slice %21 {offsets = [0, 8], sizes = [2, 1], strides = [1, 1]} : vector<2x10xf32> to vector<2x1xf32>
    %24 = vector.extract_strided_slice %21 {offsets = [0, 9], sizes = [2, 1], strides = [1, 1]} : vector<2x10xf32> to vector<2x1xf32>
    %25 = vector.shape_cast %23 : vector<2x1xf32> to vector<2x1x1xf32>
    %26 = vector.broadcast %25 : vector<2x1x1xf32> to vector<2x4x1xf32>
    %27 = arith.addf %2, %26 : vector<2x4x1xf32>
    %28 = vector.shape_cast %24 : vector<2x1xf32> to vector<2x1x1xf32>
    %29 = vector.broadcast %28 : vector<2x1x1xf32> to vector<2x4x1xf32>
    %30 = arith.addf %3, %29 : vector<2x4x1xf32>
    %31 = arith.mulf %27, %30 : vector<2x4x1xf32>
    %cst_15 = arith.constant dense<0.000000e+00> : vector<2x1xf32>
    %32 = vector.multi_reduction <add>, %31, %cst_15 [1] : vector<2x4x1xf32> to vector<2x1xf32>
    %33 = vector.broadcast %32 : vector<2x1xf32> to vector<2x8xf32>
    %34 = arith.mulf %33, %22 : vector<2x8xf32>
    %35 = vector.broadcast %31 : vector<2x4x1xf32> to vector<2x4x8xf32>
    %36 = arith.mulf %35, %0 : vector<2x4x8xf32>
    %cst_16 = arith.constant dense<0.000000e+00> : vector<2x8xf32>
    %37 = vector.multi_reduction <add>, %36, %cst_16 [1] : vector<2x4x8xf32> to vector<2x8xf32>
    %38 = arith.addf %34, %37 : vector<2x8xf32>
    %39 = arith.subf %5, %38 : vector<2x8xf32>
    %c1_i32 = arith.constant 1 : i32
    %40 = math.cos %39 : vector<2x8xf32>
    %cst_17 = arith.constant 1.000000e+00 : f32
    %41 = vector.broadcast %cst_17 : f32 to vector<2x8xf32>
    %42 = arith.mulf %41, %40 : vector<2x8xf32>
    %43 = math.sin %39 : vector<2x8xf32>
    %cst_18 = arith.constant 1.000000e+00 : f32
    %44 = vector.broadcast %cst_18 : f32 to vector<2x8xf32>
    %45 = arith.mulf %44, %43 : vector<2x8xf32>
    %46 = arith.index_cast %c1_i32 : i32 to index
    %c0_19 = arith.constant 0 : index
    %c0_20 = arith.constant 0 : index
    %47 = vector.load %arg5[%46, %c0_19, %c0_20] : memref<4x2x8xf32, #tpu.memory_space<vmem>>, vector<1x2x8xf32>
    %48 = vector.shape_cast %47 : vector<1x2x8xf32> to vector<2x8xf32>
    %49 = vector.shape_cast %42 : vector<2x8xf32> to vector<1x2x8xf32>
    tpu.vector_store %arg5[%46, %c0_19, %c0_20], %49 {strides = array<i32>} : memref<4x2x8xf32, #tpu.memory_space<vmem>>, vector<1x2x8xf32>,
    %50 = arith.index_cast %c1_i32 : i32 to index
    %c0_21 = arith.constant 0 : index
    %c0_22 = arith.constant 0 : index
    %51 = vector.load %arg6[%50, %c0_21, %c0_22] : memref<4x2x8xf32, #tpu.memory_space<vmem>>, vector<1x2x8xf32>
    %52 = vector.shape_cast %51 : vector<1x2x8xf32> to vector<2x8xf32>
    %53 = vector.shape_cast %45 : vector<2x8xf32> to vector<1x2x8xf32>
    tpu.vector_store %arg6[%50, %c0_21, %c0_22], %53 {strides = array<i32>} : memref<4x2x8xf32, #tpu.memory_space<vmem>>, vector<1x2x8xf32>,
    %54 = tpu.concatenate %42, %45 in 1 : vector<2x8xf32>, vector<2x8xf32> -> vector<2x16xf32>
    %cst_23 = arith.constant dense<0.000000e+00> : vector<2x10xf32>
    %55 = tpu.matmul %54, %4, %cst_23 {dimension_numbers = #tpu.dot_dimension_numbers<[1], [0], [0], [1], [0, 0, 1, 1], [], []>} : vector<2x16xf32>, vector<16x10xf32>, vector<2x10xf32> -> vector<2x10xf32>
    %56 = vector.extract_strided_slice %55 {offsets = [0, 0], sizes = [2, 8], strides = [1, 1]} : vector<2x10xf32> to vector<2x8xf32>
    %57 = vector.extract_strided_slice %55 {offsets = [0, 8], sizes = [2, 1], strides = [1, 1]} : vector<2x10xf32> to vector<2x1xf32>
    %58 = vector.extract_strided_slice %55 {offsets = [0, 9], sizes = [2, 1], strides = [1, 1]} : vector<2x10xf32> to vector<2x1xf32>
    %59 = vector.shape_cast %57 : vector<2x1xf32> to vector<2x1x1xf32>
    %60 = vector.broadcast %59 : vector<2x1x1xf32> to vector<2x4x1xf32>
    %61 = arith.addf %2, %60 : vector<2x4x1xf32>
    %62 = vector.shape_cast %58 : vector<2x1xf32> to vector<2x1x1xf32>
    %63 = vector.broadcast %62 : vector<2x1x1xf32> to vector<2x4x1xf32>
    %64 = arith.addf %3, %63 : vector<2x4x1xf32>
    %65 = arith.mulf %61, %64 : vector<2x4x1xf32>
    %cst_24 = arith.constant dense<0.000000e+00> : vector<2x1xf32>
    %66 = vector.multi_reduction <add>, %65, %cst_24 [1] : vector<2x4x1xf32> to vector<2x1xf32>
    %67 = vector.broadcast %66 : vector<2x1xf32> to vector<2x8xf32>
    %68 = arith.mulf %67, %56 : vector<2x8xf32>
    %69 = vector.broadcast %65 : vector<2x4x1xf32> to vector<2x4x8xf32>
    %70 = arith.mulf %69, %0 : vector<2x4x8xf32>
    %cst_25 = arith.constant dense<0.000000e+00> : vector<2x8xf32>
    %71 = vector.multi_reduction <add>, %70, %cst_25 [1] : vector<2x4x8xf32> to vector<2x8xf32>
    %72 = arith.addf %68, %71 : vector<2x8xf32>
    %73 = arith.subf %39, %72 : vector<2x8xf32>
    %c2_i32 = arith.constant 2 : i32
    %74 = math.cos %73 : vector<2x8xf32>
    %cst_26 = arith.constant 1.000000e+00 : f32
    %75 = vector.broadcast %cst_26 : f32 to vector<2x8xf32>
    %76 = arith.mulf %75, %74 : vector<2x8xf32>
    %77 = math.sin %73 : vector<2x8xf32>
    %cst_27 = arith.constant 1.000000e+00 : f32
    %78 = vector.broadcast %cst_27 : f32 to vector<2x8xf32>
    %79 = arith.mulf %78, %77 : vector<2x8xf32>
    %80 = arith.index_cast %c2_i32 : i32 to index
    %c0_28 = arith.constant 0 : index
    %c0_29 = arith.constant 0 : index
    %81 = vector.load %arg5[%80, %c0_28, %c0_29] : memref<4x2x8xf32, #tpu.memory_space<vmem>>, vector<1x2x8xf32>
    %82 = vector.shape_cast %81 : vector<1x2x8xf32> to vector<2x8xf32>
    %83 = vector.shape_cast %76 : vector<2x8xf32> to vector<1x2x8xf32>
    tpu.vector_store %arg5[%80, %c0_28, %c0_29], %83 {strides = array<i32>} : memref<4x2x8xf32, #tpu.memory_space<vmem>>, vector<1x2x8xf32>,
    %84 = arith.index_cast %c2_i32 : i32 to index
    %c0_30 = arith.constant 0 : index
    %c0_31 = arith.constant 0 : index
    %85 = vector.load %arg6[%84, %c0_30, %c0_31] : memref<4x2x8xf32, #tpu.memory_space<vmem>>, vector<1x2x8xf32>
    %86 = vector.shape_cast %85 : vector<1x2x8xf32> to vector<2x8xf32>
    %87 = vector.shape_cast %79 : vector<2x8xf32> to vector<1x2x8xf32>
    tpu.vector_store %arg6[%84, %c0_30, %c0_31], %87 {strides = array<i32>} : memref<4x2x8xf32, #tpu.memory_space<vmem>>, vector<1x2x8xf32>,
    %88 = tpu.concatenate %76, %79 in 1 : vector<2x8xf32>, vector<2x8xf32> -> vector<2x16xf32>
    %cst_32 = arith.constant dense<0.000000e+00> : vector<2x10xf32>
    %89 = tpu.matmul %88, %4, %cst_32 {dimension_numbers = #tpu.dot_dimension_numbers<[1], [0], [0], [1], [0, 0, 1, 1], [], []>} : vector<2x16xf32>, vector<16x10xf32>, vector<2x10xf32> -> vector<2x10xf32>
    %90 = vector.extract_strided_slice %89 {offsets = [0, 0], sizes = [2, 8], strides = [1, 1]} : vector<2x10xf32> to vector<2x8xf32>
    %91 = vector.extract_strided_slice %89 {offsets = [0, 8], sizes = [2, 1], strides = [1, 1]} : vector<2x10xf32> to vector<2x1xf32>
    %92 = vector.extract_strided_slice %89 {offsets = [0, 9], sizes = [2, 1], strides = [1, 1]} : vector<2x10xf32> to vector<2x1xf32>
    %93 = vector.shape_cast %91 : vector<2x1xf32> to vector<2x1x1xf32>
    %94 = vector.broadcast %93 : vector<2x1x1xf32> to vector<2x4x1xf32>
    %95 = arith.addf %2, %94 : vector<2x4x1xf32>
    %96 = vector.shape_cast %92 : vector<2x1xf32> to vector<2x1x1xf32>
    %97 = vector.broadcast %96 : vector<2x1x1xf32> to vector<2x4x1xf32>
    %98 = arith.addf %3, %97 : vector<2x4x1xf32>
    %99 = arith.mulf %95, %98 : vector<2x4x1xf32>
    %cst_33 = arith.constant dense<0.000000e+00> : vector<2x1xf32>
    %100 = vector.multi_reduction <add>, %99, %cst_33 [1] : vector<2x4x1xf32> to vector<2x1xf32>
    %101 = vector.broadcast %100 : vector<2x1xf32> to vector<2x8xf32>
    %102 = arith.mulf %101, %90 : vector<2x8xf32>
    %103 = vector.broadcast %99 : vector<2x4x1xf32> to vector<2x4x8xf32>
    %104 = arith.mulf %103, %0 : vector<2x4x8xf32>
    %cst_34 = arith.constant dense<0.000000e+00> : vector<2x8xf32>
    %105 = vector.multi_reduction <add>, %104, %cst_34 [1] : vector<2x4x8xf32> to vector<2x8xf32>
    %106 = arith.addf %102, %105 : vector<2x8xf32>
    %107 = arith.subf %73, %106 : vector<2x8xf32>
    %c3_i32 = arith.constant 3 : i32
    %108 = math.cos %107 : vector<2x8xf32>
    %cst_35 = arith.constant 1.000000e+00 : f32
    %109 = vector.broadcast %cst_35 : f32 to vector<2x8xf32>
    %110 = arith.mulf %109, %108 : vector<2x8xf32>
    %c3 = arith.constant 3 : index
    %c0_36 = arith.constant 0 : index
    %c0_37 = arith.constant 0 : index
    %111 = vector.load %arg5[%c3, %c0_36, %c0_37] : memref<4x2x8xf32, #tpu.memory_space<vmem>>, vector<1x2x8xf32>
    %112 = vector.shape_cast %111 : vector<1x2x8xf32> to vector<2x8xf32>
    %113 = vector.shape_cast %110 : vector<2x8xf32> to vector<1x2x8xf32>
    tpu.vector_store %arg5[%c3, %c0_36, %c0_37], %113 {strides = array<i32>} : memref<4x2x8xf32, #tpu.memory_space<vmem>>, vector<1x2x8xf32>,
    %114 = math.sin %107 : vector<2x8xf32>
    %cst_38 = arith.constant 1.000000e+00 : f32
    %115 = vector.broadcast %cst_38 : f32 to vector<2x8xf32>
    %116 = arith.mulf %115, %114 : vector<2x8xf32>
    %c3_39 = arith.constant 3 : index
    %c0_40 = arith.constant 0 : index
    %c0_41 = arith.constant 0 : index
    %117 = vector.load %arg6[%c3_39, %c0_40, %c0_41] : memref<4x2x8xf32, #tpu.memory_space<vmem>>, vector<1x2x8xf32>
    %118 = vector.shape_cast %117 : vector<1x2x8xf32> to vector<2x8xf32>
    %119 = vector.shape_cast %116 : vector<2x8xf32> to vector<1x2x8xf32>
    tpu.vector_store %arg6[%c3_39, %c0_40, %c0_41], %119 {strides = array<i32>} : memref<4x2x8xf32, #tpu.memory_space<vmem>>, vector<1x2x8xf32>,
    return
  }
  func.func @transform_0(%arg0: i32) -> (i32, i32) {
    %c0_i32 = arith.constant 0 : i32
    %c0_i32_0 = arith.constant 0 : i32
    return %arg0, %c0_i32 : i32, i32
  }
  func.func @transform_1(%arg0: i32) -> (i32, i32, i32) {
    %c0_i32 = arith.constant 0 : i32
    %c0_i32_0 = arith.constant 0 : i32
    %c0_i32_1 = arith.constant 0 : i32
    return %arg0, %c0_i32, %c0_i32_0 : i32, i32, i32
  }
  func.func @transform_2(%arg0: i32) -> (i32, i32, i32) {
    %c0_i32 = arith.constant 0 : i32
    %c0_i32_0 = arith.constant 0 : i32
    %c0_i32_1 = arith.constant 0 : i32
    return %arg0, %c0_i32, %c0_i32_0 : i32, i32, i32
  }
  func.func @transform_3(%arg0: i32) -> (i32, i32) {
    %c0_i32 = arith.constant 0 : i32
    %c0_i32_0 = arith.constant 0 : i32
    %c0_i32_1 = arith.constant 0 : i32
    return %c0_i32, %c0_i32_0 : i32, i32
  }
  func.func @transform_4(%arg0: i32) -> (i32, i32, i32) {
    %c0_i32 = arith.constant 0 : i32
    %c0_i32_0 = arith.constant 0 : i32
    %c0_i32_1 = arith.constant 0 : i32
    return %c0_i32, %arg0, %c0_i32_0 : i32, i32, i32
  }
  func.func @transform_5(%arg0: i32) -> (i32, i32, i32) {
    %c0_i32 = arith.constant 0 : i32
    %c0_i32_0 = arith.constant 0 : i32
    %c0_i32_1 = arith.constant 0 : i32
    return %c0_i32, %arg0, %c0_i32_0 : i32, i32, i32
  }
}

</mosaic_0001>

<bundles_post_ra>
// kernel: tpu_custom_call.1
= control target key start
LH: loop header
LB: loop body
LE: loop exit
PB: predicated region body
PF: predicated region fallthrough
CT: control target
= control target key end

     0   :  { %11 = vsyncpa [#allocation3], 0  ;;  %s2030_s0 = inlined_call_operand.vmem [shape: f32[2,8], index: 0, kind: input, shape index: {}]   ;;  %s2031_s1 = inlined_call_operand.hbm [shape: f32[2,4,8], index: 1, kind: input, shape index: {}]   ;;  %s2032_s2 = inlined_call_operand.vmem [shape: f32[2,4,2], index: 2, kind: input, shape index: {}]   ;;  %s2033_s3 = inlined_call_operand.vmem [shape: f32[16,10], index: 3, kind: input, shape index: {}]   ;;  %s2034_s4 = inlined_call_operand.hbm [shape: f32[4,2,8], index: 4, kind: output, shape index: {0}]   ;;  %s2035_s5 = inlined_call_operand.hbm [shape: f32[4,2,8], index: 5, kind: output, shape index: {1}]  }
   0x1   :  { %12 = vsyncpa [#allocation4], 0 }
   0x2   :  { %13 = vsyncpa [#allocation7], 0  ;;  %s1694_s18 = smov [#allocation2]   ;;  %s1622_s22 = scalar_lea.hbm %s2031_s1, 128 }
   0x3   :  { %s21_s19 = sshll.u32 %s1694_s18, 4  ;;  %p1623_p0 = scmp.ne.s32.totalorder %s2031_s1, %s1622_s22  ;;  %s22_s19 = int_to_ptr.vmem [resolvable:$true] %s21_s19 }
   0x4   :  { %p1626_p1 = scmp.lt.u32.totalorder %s1622_s22, %s2031_s1 }
   0x6   :  { %p1628_p2 = pnand %p1626_p1, %p1623_p0 }
   0x8   :  { %1631 = shalt.err (!%p1628_p2)
}
   0x9   :  { %s1632_s27 = scalar_lea.vmem %s22_s19, 128  ;;  %p1637_p4 = scmp.lt.s32.totalorder %s22_s19, %s22_s19 }
   0xa   :  { %p1633_p3 = scmp.ne.s32.totalorder %s22_s19, %s1632_s27  ;;  %p1638_p5 = scmp.lt.s32.totalorder %s1632_s27, %s1632_s27 }
   0xc   :  { %p1639_p6 = por %p1638_p5, %p1637_p4 }
   0xe   :  { %p1640_p7 = pnand %p1639_p6, %p1633_p3 }
  0x10   :  { %1643 = shalt.err (!%p1640_p7)
}
  0x11   :  { %s1695_s28 = smov 64   ;;  %s1696_s29 = smov 4  }
  0x12   :  { %27 = dma.hbm_to_vmem [thread:$0]  %s2031_s1, 128, %s22_s19, [#allocation3], %s1695_s28, %s1695_s28, %s1696_s29  }
  0x13   :  { %1688 = dma.done.wait [#allocation3], 128  }
  0x14   :  { %1689 = vsyncadd [#allocation3], 4294967168  ;;  %v1697_v0 = vmov 0.0|0.0   ;;  %v1760_v1 = vld [vmem:[%s2030_s0] sm:$0x3]  ;;  %v40_v3 = vld [vmem:[%s2033_s3 + $0x8] sm:$0xff] }
  0x15   :  { %1558 = vmatprep.subr.bf16.mxu0 %v1697_v0  ;;  %1561 = vmatprep.subr.bf16.mxu1 %v1697_v0  ;;  %v39_v2 = vld [vmem:[%s2033_s3] sm:$0xff]  ;;  %v45_v4 = vand.u32 2139095040, %v1760_v1  ;;  %v42_v7 = vand.u32 2147483647, %v1760_v1  ;;  %v1698_v16 = vmov 683565275  }
  0x16   :  { %v1769_v5 = vpack.c.bf16 %v40_v3, %v39_v2  ;;  %v1699_v18 = vmov 2475754826   ;;  %v1700_v20 = vmov 2131351028   ;;  %v1701_v22 = vmov 2102212464  }
  0x17   :  { %v46_v6 = vshrl.u32 %v45_v4, 23  ;;  %v49_v10 = vand.u32 8388607, %v42_v7  ;;  %v1702_v24 = vmov 920167782   ;;  %vm44_vm7 = vcmp.lt.s32.totalorder %v1760_v1, 0 }
  0x18   :  { %1560 = vmatpush3.bf16.msra.mxu0 %v1769_v5  ;;  %1563 = vmatpush3.bf16.msra.mxu1 %v1769_v5  ;;  %v1703_v31 = vmov 1326507024   ;;  %vm43_vm8 = vcmp.le.f32.partialorder %v42_v7, 0.7853982  ;;  %vm1704_vm9 = vmmov 0   ;;  %s1706_s0 = smov 8  }
  0x19   :  { %v1493_v8 = vadd.s32 4294967169, %v46_v6  ;;  %1564 = vmatprep.subr.bf16.mxu0 %v1697_v0  ;;  %v50_v13 = vor.u32 8388608, %v49_v10  ;;  %s1708_s1 = smov 120   ;;  %s1710_s16 = smov 127  }
  0x1a   :  { %s1712_s18 = smov [#allocation6]  }
  0x1b   :  { %v52_v9 = vadd.s32 1, %v1493_v8  ;;  %v90_v33 = vshll.u32 %v50_v13, 8  ;;  %s1477_s19 = sshll.u32 %s1712_s18, 4  ;;  %s1997_s19 = int_to_ptr.vmem [resolvable:$true] %s1477_s19 }
  0x1d   :  { %vm53_vm0 = vcmp.gt.s32.totalorder %v52_v9, 0 }
  0x1e   :  { %v54_v11 = vsel %vm53_vm0, %v52_v9, 0  ;;  %vm134_vm0 = vweird.f32 %v1760_v1 }
  0x1f   :  { %v56_v12 = vand.u32 31, %v54_v11  ;;  %v55_v14 = vshrl.u32 %v54_v11, 5 }
  0x21   :  { %v57_v15 = vsub.s32 32, %v56_v12  ;;  %v59_v17 = vshll.u32 %v1698_v16, %v56_v12  ;;  %v62_v19 = vshll.u32 %v1699_v18, %v56_v12  ;;  %v65_v21 = vshll.u32 %v1700_v20, %v56_v12 }
  0x22   :  { %v68_v23 = vshll.u32 %v1701_v22, %v56_v12  ;;  %v71_v25 = vshll.u32 %v1702_v24, %v56_v12  ;;  %vm74_vm1 = vcmp.lt.s32.totalorder %v55_v14, 1  ;;  %vm77_vm2 = vcmp.lt.s32.totalorder %v55_v14, 4 }
  0x23   :  { %v58_v26 = vshrl.u32 %v1698_v16, %v57_v15  ;;  %v60_v27 = vshrl.u32 %v1699_v18, %v57_v15  ;;  %v63_v28 = vshrl.u32 %v1700_v20, %v57_v15  ;;  %v66_v29 = vshrl.u32 %v1701_v22, %v57_v15 }
  0x24   :  { %v69_v30 = vshrl.u32 %v1702_v24, %v57_v15  ;;  %v72_v32 = vshrl.u32 %v1703_v31, %v57_v15  ;;  %vm75_vm3 = vcmp.lt.s32.totalorder %v55_v14, 2  ;;  %vm76_vm4 = vcmp.lt.s32.totalorder %v55_v14, 3 }
  0x25   :  { %v61_v34 = vor.u32 %v60_v27, %v59_v17  ;;  %v64_v35 = vor.u32 %v63_v28, %v62_v19  ;;  %v67_v36 = vor.u32 %v66_v29, %v65_v21 }
  0x26   :  { %v70_v37 = vor.u32 %v69_v30, %v68_v23  ;;  %v73_v38 = vor.u32 %v72_v32, %v71_v25  ;;  %v1705_v32 = vmov 0.0  }
  0x27   :  { %v78_v39 = vsel %vm74_vm1, %v58_v26, %v61_v34  ;;  %v79_v40 = vsel %vm77_vm2, %v67_v36, 2102212464  ;;  %v82_v41 = vsel %vm74_vm1, %v61_v34, %v64_v35  ;;  %v86_v42 = vsel %vm74_vm1, %v64_v35, %v67_v36  ;;  %1541 = vmatprep.mubr.msk.f32.mxu0 %vm1704_vm9, %v1705_v32  ;;  %1548 = vmatprep.mubr.msk.f32.mxu1 %vm1704_vm9, %v1705_v32 }
  0x28   :  { %v80_v43 = vsel %vm76_vm4, %v64_v35, %v79_v40  ;;  %v83_v44 = vsel %vm77_vm2, %v70_v37, 920167782  ;;  %v87_v45 = vsel %vm77_vm2, %v73_v38, 1326507024  ;;  %vm249_vm1 = vcmask 58368  }
  0x29   :  { %v84_v46 = vsel %vm76_vm4, %v67_v36, %v83_v44  ;;  %v88_v47 = vsel %vm76_vm4, %v70_v37, %v87_v45  ;;  %v81_v48 = vsel %vm75_vm3, %v78_v39, %v80_v43  ;;  %vm256_vm2 = vcmask 64512  }
  0x2a   :  { %v85_v49 = vsel %vm75_vm3, %v82_v41, %v84_v46  ;;  %v89_v50 = vsel %vm75_vm3, %v86_v42, %v88_v47  ;;  %v97_v55 = vmul.u32 %v90_v33, %v81_v48  ;;  %vm258_vm3 = vcmask 130048  }
  0x2b   :  { %v1787_v51 = vmul.u32.u64.low %v90_v33, %v89_v50  ;;  %v1788_v52 = vmul.u32.u64.high %v90_v33, %v89_v50, %v1787_v51  ;;  %v1790_v53 = vmul.u32.u64.low %v90_v33, %v85_v49  ;;  %v1791_v54 = vmul.u32.u64.high %v90_v33, %v85_v49, %v1790_v53 }
  0x2c   :  { %v1707_v48 = vmov 1966171168   ;;  %v336_v50 = vlaneseq  ;;  %vm381_vm4 = vcmask 3072  }
  0x2d   :  { %vm99_vm5 = vc.u32 %v1788_v52, %v1790_v53  ;;  %v100_v56 = vadd.s32 1, %v1791_v54  ;;  %v98_v4 = vadd.s32 %v1790_v53, %v1788_v52  ;;  %v334_v49 = vunpack.c.l.s4 %v1707_v48 }
  0x2e   :  { %v337_v52 = vshrl.u32 %v336_v50, 7 }
  0x2f   :  { %v101_v57 = vsel %vm99_vm5, %v100_v56, %v1791_v54  ;;  %v335_v51 = vunpack.c.0.s8 %v334_v49  ;;  %vm423_vm5 = vcmask 60416  }
  0x30   :  { %v102_v58 = vadd.s32 %v101_v57, %v97_v55  ;;  %v1817_v57 = vsub.s32 0, %v337_v52 }
  0x31   :  { %v1811_v53 = vsub.s32 %v335_v51, %v337_v52 }
  0x32   :  { %v103_v59 = vadd.s32 536870912, %v102_v58 }
  0x34   :  { %v104_v60 = vshrl.u32 %v103_v59, 30 }
  0x36   :  { %v105_v61 = vshll.u32 %v104_v60, 30  ;;  %v128_v21 = vsub.s32 4, %v104_v60 }
  0x38   :  { %v106_v62 = vsub.s32 %v102_v58, %v105_v61  ;;  %v129_v26 = vsel %vm44_vm7, %v128_v21, %v104_v60 }
  0x39   :  { %v131_v29 = vsel %vm43_vm8, 0, %v129_v26 }
  0x3a   :  { %v108_v63 = vsub.s32 0, %v106_v62  ;;  %v238_v30 = vadd.s32 3, %v131_v29  ;;  %v135_v33 = vand.u32 3, %v131_v29 }
  0x3c   :  { %v1494_v0 = vmin.u32 %v108_v63, %v106_v62  ;;  %v239_v34 = vand.u32 3, %v238_v30  ;;  %vm140_vm10 = vcmp.eq.s32.totalorder %v135_v33, 2  ;;  %vm137_vm12 = vcmp.eq.s32.totalorder %v135_v33, 0  ;;  %v1828_v63 = vld [vmem:[%s2032_s2] sm:$0xf] }
  0x3d   :  { %vm136_vm14 = vcmp.lt.s32.totalorder %v135_v33, 2 }
  0x3e   :  { %v110_v2 = vclz %v1494_v0  ;;  %vm244_vm11 = vcmp.eq.s32.totalorder %v239_v34, 2  ;;  %vm241_vm13 = vcmp.eq.s32.totalorder %v239_v34, 0  ;;  %vm240_vm15 = vcmp.lt.s32.totalorder %v239_v34, 2  ;;  %v1843_v34 = vld [vmem:[#allocation2 + $0x4] sm:$0xf] }
  0x40   :  { %v1495_v3 = vadd.s32 4294967294, %v110_v2  ;;  %v1833_v2 = vld [vmem:[%s2032_s2 + $0x4] sm:$0xf]  ;;  %s1711_s2 = smov [#allocation5]  }
  0x41   :  { %s1465_s17 = sshll.u32 %s1711_s2, 4  ;;  %s1466_s17 = int_to_ptr.vmem [resolvable:$true] %s1465_s17 }
  0x42   :  { %vm1496_vm6 = vcmp.lt.s32.totalorder %v1495_v3, 0  ;;  %s1644_s20 = scalar_lea.vmem %s1466_s17, 128  ;;  %p1649_p9 = scmp.lt.s32.totalorder %s1466_s17, %s1466_s17 }
  0x43   :  { %v113_v6 = vsel %vm1496_vm6, 0, %v1495_v3  ;;  %vm443_vm6 = vcmask 1041409   ;;  %p1645_p8 = scmp.ne.s32.totalorder %s1466_s17, %s1644_s20  ;;  %p1650_p10 = scmp.lt.s32.totalorder %s1644_s20, %s1644_s20 }
  0x44   :  { %v114_v8 = vsub.s32 32, %v113_v6  ;;  %v115_v9 = vshll.u32 %v106_v62, %v113_v6  ;;  %v118_v10 = vsub.s32 4294967266, %v113_v6  ;;  %v1709_v62 = vmov 0  }
  0x45   :  { %1605 = vset.pattern.permute.xlu0 %v1709_v62  ;;  %1604 = vset.pattern.permute.xlu1 %v1709_v62  ;;  %p1651_p11 = por %p1650_p10, %p1649_p9 }
  0x46   :  { %v116_v11 = vshrl.u32 %v98_v4, %v114_v8  ;;  %v119_v12 = vadd.s32 127, %v118_v10 }
  0x47   :  { %p1652_p12 = pnand %p1651_p11, %p1645_p8 }
  0x48   :  { %v117_v13 = vor.u32 %v116_v11, %v115_v9  ;;  %v120_v14 = vshll.u32 %v119_v12, 23 }
  0x4a   :  { %v121_v15 = vor.u32 4788187, %v120_v14  ;;  %v124_v17 = vcvt.s32.f32 %v117_v13 }
  0x4c   :  { %v122_v19 = vand.u32 2147483647, %v121_v15 }
  0x4e   :  { %v125_v23 = vmul.f32 %v124_v17, %v122_v19 }
  0x50   :  { %v126_v25 = vxor.u32 2147483648, %v125_v23 }
  0x52   :  { %v127_v27 = vsel %vm44_vm7, %v126_v25, %v125_v23 }
  0x53   :  { %v130_v28 = vsel %vm43_vm8, %v1760_v1, %v127_v27 }
  0x54   :  { %1606 = vcosq.f32 %v130_v28 }
  0x55   :  { %1608 = vsinq.f32 %v130_v28 }
  0x5e   :  { %v1607_v35 = vpop.eup %1606 }
  0x5f   :  { %v1609_v7 = vpop.eup %1608  ;;  %v141_v36 = vxor.u32 2147483648, %v1607_v35 }
  0x60   :  { %v138_v37 = vxor.u32 2147483648, %v1609_v7 }
  0x61   :  { %v246_v38 = vsel %vm244_vm11, %v141_v36, %v1609_v7  ;;  %v142_v39 = vsel %vm140_vm10, %v141_v36, %v1609_v7 }
  0x62   :  { %v243_v40 = vsel %vm241_vm13, %v1607_v35, %v138_v37  ;;  %v139_v41 = vsel %vm137_vm12, %v1607_v35, %v138_v37 }
  0x63   :  { %v247_v42 = vsel %vm240_vm15, %v243_v40, %v246_v38  ;;  %v143_v43 = vsel %vm136_vm14, %v139_v41, %v142_v39 }
  0x64   :  { %v248_v44 = vsel %vm134_vm0, nan, %v247_v42  ;;  %v144_v45 = vsel %vm134_vm0, nan, %v143_v43 }
  0x65   :  { %253 = vrot.lane.b32.xlu0 %v248_v44, %s1706_s0  ;;  %250 = vst.msk [vmem:[#allocation5] sm:$0x3] %vm249_vm1, %v144_v45  ;;  %251 = vst.msk [vmem:[#allocation6] sm:$0x3] %vm249_vm1, %v248_v44 }
  0xd7   :  { %v254_v46 = vpop.permute.xlu0 %253 }
  0xd8   :  { %v257_v47 = vsel %vm256_vm2, %v144_v45, %v254_v46 }
  0xd9   :  { %1542 = vmatmul.mubr.msk.f32.vlgmr.msra.gmra.mrb[0].mxu0 %vm258_vm3, %v257_v47 }
  0xda   :  { %1566 = vmatpush3.bf16.msra.mxu0 %v1769_v5  ;;  %1555 = vmatprep.mubr.msk.f32.mxu0 %vm1704_vm9, %v1705_v32  ;;  %v1841_v32 = vld [vmem:[#allocation2] sm:$0xf] }
 0x1ac   :  { %v1813_v54 = vpop.f32.mrb[0].mxu0 }
 0x1ad   :  { %v339_v55 = vrot.slane %v1813_v54, %v1811_v53  ;;  %v1543_v56 = vpop.f32.mrb[1].mxu0  ;;  %v406_v47 = vrot.slane %v1813_v54, 1 }
 0x1af   :  { %v340_v58 = vcombine.high %v339_v55, %v339_v55  ;;  %v347_v5 = vrot.slane %v339_v55, %v1811_v53 }
 0x1b1   :  { %v358_v59 = vrot.slane %v347_v5, %v1817_v57  ;;  %v354_v60 = vrot.slane %v340_v58, %v1811_v53 }
 0x1b3   :  { %363 = vrot.lane.b32.xlu1 %v358_v59, %s1708_s1  ;;  %v362_v61 = vrot.slane %v354_v60, %v1817_v57 }
 0x1b5   :  { %365 = vrot.lane.b32.xlu0 %v362_v61, %s1708_s1 }
 0x225   :  { %v364_v0 = vpop.permute.xlu1 %363 }
 0x226   :  { %v369_v3 = vadd.f32 %v364_v0, %v1828_v63 }
 0x227   :  { %v366_v4 = vpop.permute.xlu0 %365 }
 0x228   :  { %v370_v6 = vadd.f32 %v366_v4, %v1833_v2  ;;  %373 = vrot.lane.b32.xlu0 %v369_v3, %s1710_s16 }
 0x22a   :  { %375 = vrot.lane.b32.xlu1 %v370_v6, %s1710_s16 }
 0x29a   :  { %v374_v8 = vpop.permute.xlu0 %373 }
 0x29b   :  { %v379_v9 = vmul.f32 %v374_v8, %v369_v3 }
 0x29c   :  { %v376_v10 = vpop.permute.xlu1 %375 }
 0x29d   :  { %v382_v11 = vsel %vm381_vm4, %v379_v9, 0.0  ;;  %v380_v12 = vmul.f32 %v376_v10, %v370_v6  ;;  %413 = vperm.xlu0 %1605, %v379_v9  }
 0x29e   :  { %v383_v13 = vrot.slane %v382_v11, 4 }
 0x29f   :  { %v389_v14 = vsel %vm381_vm4, %v380_v12, 0.0  ;;  %418 = vperm.xlu1 %1604, %v380_v12  }
 0x2a0   :  { %v384_v15 = vadd.f32 %v383_v13, %v382_v11  ;;  %v390_v17 = vrot.slane %v389_v14, 4 }
 0x2a2   :  { %v385_v19 = vrot.slane %v384_v15, 2  ;;  %v391_v21 = vadd.f32 %v390_v17, %v389_v14 }
 0x2a4   :  { %v392_v23 = vrot.slane %v391_v21, 2  ;;  %v386_v25 = vadd.f32 %v385_v19, %v384_v15 }
 0x2a6   :  { %v393_v26 = vadd.f32 %v392_v23, %v391_v21  ;;  %v387_v29 = vrot.slane %v386_v25, 1 }
 0x2a8   :  { %v394_v27 = vrot.slane %v393_v26, 1  ;;  %v388_v30 = vadd.f32 %v387_v29, %v386_v25 }
 0x2aa   :  { %v395_v28 = vadd.f32 %v394_v27, %v393_v26 }
 0x2ac   :  { %403 = vperm.xlu1 %1604, %v395_v28  }
 0x2b0   :  { %398 = vperm.xlu1 %1604, %v388_v30  }
 0x31c   :  { %v414_v33 = vpop.permute.xlu0 %413 }
 0x31d   :  { %v421_v35 = vmul.f32 %v414_v33, %v1841_v32 }
 0x31e   :  { %v419_v7 = vpop.permute.xlu1 %418 }
 0x31f   :  { %v424_v36 = vsel %vm423_vm5, %v421_v35, 0.0  ;;  %v422_v37 = vmul.f32 %v419_v7, %v1843_v34 }
 0x320   :  { %v425_v38 = vrot.slane %v424_v36, 4 }
 0x321   :  { %v431_v39 = vsel %vm423_vm5, %v422_v37, 0.0 }
 0x322   :  { %v426_v40 = vadd.f32 %v425_v38, %v424_v36  ;;  %v432_v41 = vrot.slane %v431_v39, 4 }
 0x324   :  { %v427_v42 = vrot.slane %v426_v40, 2  ;;  %v433_v43 = vadd.f32 %v432_v41, %v431_v39 }
 0x326   :  { %v434_v44 = vrot.slane %v433_v43, 2  ;;  %v428_v45 = vadd.f32 %v427_v42, %v426_v40 }
 0x328   :  { %v435_v46 = vadd.f32 %v434_v44, %v433_v43  ;;  %v429_v52 = vrot.slane %v428_v45, 1 }
 0x32a   :  { %v436_v48 = vrot.slane %v435_v46, 1  ;;  %v430_v5 = vadd.f32 %v429_v52, %v428_v45 }
 0x32b   :  { %v404_v49 = vpop.permute.xlu1 %403 }
 0x32c   :  { %v410_v50 = vmul.f32 %v406_v47, %v404_v49  ;;  %v437_v51 = vadd.f32 %v436_v48, %v435_v46 }
 0x32e   :  { %v439_v55 = vadd.f32 %v437_v51, %v410_v50 }
 0x32f   :  { %v399_v56 = vpop.permute.xlu1 %398 }
 0x330   :  { %v409_v58 = vmul.f32 %v399_v56, %v1813_v54  ;;  %v442_v59 = vrot.slane %v439_v55, 7 }
 0x332   :  { %v438_v60 = vadd.f32 %v430_v5, %v409_v58 }
 0x334   :  { %v444_v61 = vsel %vm443_vm6, %v442_v59, %v438_v60 }
 0x335   :  { %v1853_v62 = vsub.f32 %v1760_v1, %v444_v61 }
 0x337   :  { %v450_v0 = vand.u32 2139095040, %v1853_v62  ;;  %v447_v8 = vand.u32 2147483647, %v1853_v62  ;;  %vm449_vm14 = vcmp.lt.s32.totalorder %v1853_v62, 0 }
 0x339   :  { %v451_v3 = vshrl.u32 %v450_v0, 23  ;;  %v454_v54 = vand.u32 8388607, %v447_v8  ;;  %vm448_vm15 = vcmp.le.f32.partialorder %v447_v8, 0.7853982 }
 0x33b   :  { %v1502_v4 = vadd.s32 4294967169, %v451_v3  ;;  %v455_v27 = vor.u32 8388608, %v454_v54 }
 0x33d   :  { %v457_v6 = vadd.s32 1, %v1502_v4  ;;  %v495_v43 = vshll.u32 %v455_v27, 8 }
 0x33f   :  { %vm458_vm7 = vcmp.gt.s32.totalorder %v457_v6, 0 }
 0x340   :  { %v459_v9 = vsel %vm458_vm7, %v457_v6, 0 }
 0x341   :  { %v461_v10 = vand.u32 31, %v459_v9  ;;  %v460_v12 = vshrl.u32 %v459_v9, 5 }
 0x343   :  { %v462_v11 = vsub.s32 32, %v461_v10  ;;  %v464_v13 = vshll.u32 %v1698_v16, %v461_v10  ;;  %v467_v1 = vshll.u32 %v1699_v18, %v461_v10  ;;  %v470_v17 = vshll.u32 %v1700_v20, %v461_v10 }
 0x344   :  { %v473_v21 = vshll.u32 %v1701_v22, %v461_v10  ;;  %v476_v25 = vshll.u32 %v1702_v24, %v461_v10  ;;  %vm479_vm8 = vcmp.lt.s32.totalorder %v460_v12, 1  ;;  %vm482_vm9 = vcmp.lt.s32.totalorder %v460_v12, 4 }
 0x345   :  { %v465_v14 = vshrl.u32 %v1699_v18, %v462_v11  ;;  %v468_v15 = vshrl.u32 %v1700_v20, %v462_v11  ;;  %v471_v19 = vshrl.u32 %v1701_v22, %v462_v11  ;;  %v474_v23 = vshrl.u32 %v1702_v24, %v462_v11 }
 0x346   :  { %v477_v26 = vshrl.u32 %v1703_v31, %v462_v11  ;;  %v463_v38 = vshrl.u32 %v1698_v16, %v462_v11  ;;  %vm481_vm10 = vcmp.lt.s32.totalorder %v460_v12, 3  ;;  %vm480_vm11 = vcmp.lt.s32.totalorder %v460_v12, 2 }
 0x347   :  { %v466_v28 = vor.u32 %v465_v14, %v464_v13  ;;  %v469_v29 = vor.u32 %v468_v15, %v467_v1  ;;  %v472_v30 = vor.u32 %v471_v19, %v470_v17  ;;  %v475_v33 = vor.u32 %v474_v23, %v473_v21 }
 0x348   :  { %v478_v35 = vor.u32 %v477_v26, %v476_v25 }
 0x349   :  { %v484_v7 = vsel %vm482_vm9, %v472_v30, 2102212464  ;;  %v487_v36 = vsel %vm479_vm8, %v466_v28, %v469_v29  ;;  %v491_v37 = vsel %vm479_vm8, %v469_v29, %v472_v30  ;;  %v488_v39 = vsel %vm482_vm9, %v475_v33, 920167782 }
 0x34a   :  { %v492_v40 = vsel %vm482_vm9, %v478_v35, 1326507024  ;;  %v489_v41 = vsel %vm481_vm10, %v472_v30, %v488_v39  ;;  %v483_v44 = vsel %vm479_vm8, %v463_v38, %v466_v28  ;;  %v485_v45 = vsel %vm481_vm10, %v469_v29, %v484_v7 }
 0x34b   :  { %v493_v42 = vsel %vm481_vm10, %v475_v33, %v492_v40  ;;  %v490_v46 = vsel %vm480_vm11, %v487_v36, %v489_v41  ;;  %v486_v52 = vsel %vm480_vm11, %v483_v44, %v485_v45 }
 0x34c   :  { %v494_v47 = vsel %vm480_vm11, %v491_v37, %v493_v42  ;;  %v1873_v50 = vmul.u32.u64.low %v495_v43, %v490_v46  ;;  %v1874_v51 = vmul.u32.u64.high %v495_v43, %v490_v46, %v1873_v50  ;;  %v502_v56 = vmul.u32 %v495_v43, %v486_v52 }
 0x34d   :  { %v1870_v48 = vmul.u32.u64.low %v495_v43, %v494_v47  ;;  %v1871_v49 = vmul.u32.u64.high %v495_v43, %v494_v47, %v1870_v48 }
 0x34e   :  { %v505_v55 = vadd.s32 1, %v1874_v51 }
 0x34f   :  { %vm504_vm12 = vc.u32 %v1871_v49, %v1873_v50  ;;  %v503_v54 = vadd.s32 %v1873_v50, %v1871_v49 }
 0x350   :  { %v506_v58 = vsel %vm504_vm12, %v505_v55, %v1874_v51  ;;  %vm539_vm12 = vweird.f32 %v1853_v62 }
 0x351   :  { %v507_v5 = vadd.s32 %v506_v58, %v502_v56 }
 0x353   :  { %v508_v59 = vadd.s32 536870912, %v507_v5 }
 0x355   :  { %v509_v60 = vshrl.u32 %v508_v59, 30 }
 0x357   :  { %v510_v61 = vshll.u32 %v509_v60, 30  ;;  %v533_v26 = vsub.s32 4, %v509_v60 }
 0x359   :  { %v511_v0 = vsub.s32 %v507_v5, %v510_v61  ;;  %v534_v29 = vsel %vm449_vm14, %v533_v26, %v509_v60 }
 0x35a   :  { %v536_v33 = vsel %vm448_vm15, 0, %v534_v29 }
 0x35b   :  { %v513_v3 = vsub.s32 0, %v511_v0  ;;  %v643_v35 = vadd.s32 3, %v536_v33  ;;  %v540_v7 = vand.u32 3, %v536_v33 }
 0x35d   :  { %v1503_v4 = vmin.u32 %v513_v3, %v511_v0  ;;  %v644_v36 = vand.u32 3, %v643_v35  ;;  %vm545_vm0 = vcmp.eq.s32.totalorder %v540_v7, 2  ;;  %vm542_vm8 = vcmp.eq.s32.totalorder %v540_v7, 0 }
 0x35e   :  { %vm541_vm10 = vcmp.lt.s32.totalorder %v540_v7, 2 }
 0x35f   :  { %v515_v6 = vclz %v1503_v4  ;;  %vm649_vm7 = vcmp.eq.s32.totalorder %v644_v36, 2  ;;  %vm646_vm9 = vcmp.eq.s32.totalorder %v644_v36, 0  ;;  %vm645_vm11 = vcmp.lt.s32.totalorder %v644_v36, 2 }
 0x361   :  { %v1504_v9 = vadd.s32 4294967294, %v515_v6 }
 0x363   :  { %vm1505_vm13 = vcmp.lt.s32.totalorder %v1504_v9, 0 }
 0x364   :  { %v518_v10 = vsel %vm1505_vm13, 0, %v1504_v9 }
 0x365   :  { %v519_v11 = vsub.s32 32, %v518_v10  ;;  %v523_v12 = vsub.s32 4294967266, %v518_v10  ;;  %v520_v13 = vshll.u32 %v511_v0, %v518_v10 }
 0x367   :  { %v521_v1 = vshrl.u32 %v503_v54, %v519_v11  ;;  %v524_v14 = vadd.s32 127, %v523_v12 }
 0x369   :  { %v522_v15 = vor.u32 %v521_v1, %v520_v13  ;;  %v525_v17 = vshll.u32 %v524_v14, 23 }
 0x36b   :  { %v526_v19 = vor.u32 4788187, %v525_v17  ;;  %v529_v23 = vcvt.s32.f32 %v522_v15 }
 0x36d   :  { %v527_v21 = vand.u32 2147483647, %v526_v19 }
 0x36f   :  { %v530_v25 = vmul.f32 %v529_v23, %v527_v21 }
 0x371   :  { %v531_v27 = vxor.u32 2147483648, %v530_v25 }
 0x373   :  { %v532_v28 = vsel %vm449_vm14, %v531_v27, %v530_v25 }
 0x374   :  { %v535_v30 = vsel %vm448_vm15, %v1853_v62, %v532_v28 }
 0x375   :  { %1610 = vcosq.f32 %v535_v30 }
 0x376   :  { %1612 = vsinq.f32 %v535_v30 }
 0x37f   :  { %v1611_v37 = vpop.eup %1610 }
 0x380   :  { %v1613_v38 = vpop.eup %1612  ;;  %v546_v39 = vxor.u32 2147483648, %v1611_v37 }
 0x381   :  { %v543_v40 = vxor.u32 2147483648, %v1613_v38 }
 0x382   :  { %v651_v41 = vsel %vm649_vm7, %v546_v39, %v1613_v38  ;;  %v547_v8 = vsel %vm545_vm0, %v546_v39, %v1613_v38 }
 0x383   :  { %v648_v42 = vsel %vm646_vm9, %v1611_v37, %v543_v40  ;;  %v544_v43 = vsel %vm542_vm8, %v1611_v37, %v543_v40 }
 0x384   :  { %v652_v44 = vsel %vm645_vm11, %v648_v42, %v651_v41  ;;  %v548_v45 = vsel %vm541_vm10, %v544_v43, %v547_v8 }
 0x385   :  { %v653_v46 = vsel %vm539_vm12, nan, %v652_v44  ;;  %v549_v47 = vsel %vm539_vm12, nan, %v548_v45 }
 0x386   :  { %659 = vrot.lane.b32.xlu0 %v653_v46, %s1706_s0  ;;  %655 = vst.msk [vmem:[#allocation5 + $0x2] sm:$0x3] %vm249_vm1, %v549_v47  ;;  %657 = vst.msk [vmem:[#allocation6 + $0x2] sm:$0x3] %vm249_vm1, %v653_v46 }
 0x3f8   :  { %v660_v48 = vpop.permute.xlu0 %659 }
 0x3f9   :  { %v662_v49 = vsel %vm256_vm2, %v549_v47, %v660_v48 }
 0x3fa   :  { %1549 = vmatmul.mubr.msk.f32.vlgmr.msra.gmra.mrb[0].mxu1 %vm258_vm3, %v662_v49 }
 0x4cd   :  { %v732_v50 = vpop.f32.mrb[0].mxu1 }
 0x4ce   :  { %v743_v51 = vrot.slane %v732_v50, %v1811_v53  ;;  %v1550_v52 = vpop.f32.mrb[1].mxu1  ;;  %v809_v45 = vrot.slane %v732_v50, 1 }
 0x4d0   :  { %v744_v55 = vcombine.high %v743_v51, %v743_v51  ;;  %v751_v56 = vrot.slane %v743_v51, %v1811_v53 }
 0x4d2   :  { %v762_v58 = vrot.slane %v751_v56, %v1817_v57  ;;  %v758_v5 = vrot.slane %v744_v55, %v1811_v53 }
 0x4d4   :  { %767 = vrot.lane.b32.xlu0 %v762_v58, %s1708_s1  ;;  %v766_v59 = vrot.slane %v758_v5, %v1817_v57 }
 0x4d6   :  { %769 = vrot.lane.b32.xlu1 %v766_v59, %s1708_s1 }
 0x546   :  { %v768_v60 = vpop.permute.xlu0 %767 }
 0x547   :  { %v773_v61 = vadd.f32 %v768_v60, %v1828_v63 }
 0x548   :  { %v770_v0 = vpop.permute.xlu1 %769 }
 0x549   :  { %v774_v3 = vadd.f32 %v770_v0, %v1833_v2  ;;  %777 = vrot.lane.b32.xlu0 %v773_v61, %s1710_s16 }
 0x54b   :  { %779 = vrot.lane.b32.xlu1 %v774_v3, %s1710_s16 }
 0x5bb   :  { %v778_v4 = vpop.permute.xlu0 %777 }
 0x5bc   :  { %v783_v6 = vmul.f32 %v778_v4, %v773_v61 }
 0x5bd   :  { %v780_v9 = vpop.permute.xlu1 %779 }
 0x5be   :  { %v785_v10 = vsel %vm381_vm4, %v783_v6, 0.0  ;;  %v784_v54 = vmul.f32 %v780_v9, %v774_v3  ;;  %816 = vperm.xlu0 %1605, %v783_v6  }
 0x5bf   :  { %v786_v11 = vrot.slane %v785_v10, 4 }
 0x5c0   :  { %v792_v12 = vsel %vm381_vm4, %v784_v54, 0.0  ;;  %821 = vperm.xlu1 %1604, %v784_v54  }
 0x5c1   :  { %v787_v13 = vadd.f32 %v786_v11, %v785_v10  ;;  %v793_v1 = vrot.slane %v792_v12, 4 }
 0x5c3   :  { %v788_v14 = vrot.slane %v787_v13, 2  ;;  %v794_v15 = vadd.f32 %v793_v1, %v792_v12 }
 0x5c5   :  { %v789_v17 = vadd.f32 %v788_v14, %v787_v13  ;;  %v795_v19 = vrot.slane %v794_v15, 2 }
 0x5c7   :  { %v796_v21 = vadd.f32 %v795_v19, %v794_v15  ;;  %v790_v23 = vrot.slane %v789_v17, 1 }
 0x5c9   :  { %v791_v25 = vadd.f32 %v790_v23, %v789_v17  ;;  %v797_v26 = vrot.slane %v796_v21, 1 }
 0x5cb   :  { %801 = vperm.xlu0 %1605, %v791_v25   ;;  %v798_v27 = vadd.f32 %v797_v26, %v796_v21 }
 0x5cd   :  { %806 = vperm.xlu1 %1604, %v798_v27  }
 0x63d   :  { %v817_v28 = vpop.permute.xlu0 %816 }
 0x63e   :  { %v824_v29 = vmul.f32 %v817_v28, %v1841_v32 }
 0x63f   :  { %v822_v30 = vpop.permute.xlu1 %821 }
 0x640   :  { %v826_v33 = vsel %vm423_vm5, %v824_v29, 0.0  ;;  %v825_v35 = vmul.f32 %v822_v30, %v1843_v34 }
 0x641   :  { %v827_v7 = vrot.slane %v826_v33, 4 }
 0x642   :  { %v833_v36 = vsel %vm423_vm5, %v825_v35, 0.0 }
 0x643   :  { %v828_v37 = vadd.f32 %v827_v7, %v826_v33  ;;  %v834_v38 = vrot.slane %v833_v36, 4 }
 0x645   :  { %v829_v39 = vrot.slane %v828_v37, 2  ;;  %v835_v40 = vadd.f32 %v834_v38, %v833_v36 }
 0x647   :  { %v830_v41 = vadd.f32 %v829_v39, %v828_v37  ;;  %v836_v8 = vrot.slane %v835_v40, 2 }
 0x649   :  { %v837_v42 = vadd.f32 %v836_v8, %v835_v40  ;;  %v831_v43 = vrot.slane %v830_v41, 1 }
 0x64a   :  { %v802_v44 = vpop.permute.xlu0 %801 }
 0x64b   :  { %v838_v46 = vrot.slane %v837_v42, 1  ;;  %v832_v48 = vadd.f32 %v831_v43, %v830_v41  ;;  %v812_v49 = vmul.f32 %v802_v44, %v732_v50 }
 0x64c   :  { %v807_v47 = vpop.permute.xlu1 %806 }
 0x64d   :  { %v839_v51 = vadd.f32 %v838_v46, %v837_v42  ;;  %v813_v52 = vmul.f32 %v809_v45, %v807_v47  ;;  %v840_v56 = vadd.f32 %v832_v48, %v812_v49 }
 0x64f   :  { %v841_v55 = vadd.f32 %v839_v51, %v813_v52 }
 0x651   :  { %v844_v58 = vrot.slane %v841_v55, 7 }
 0x653   :  { %v845_v5 = vsel %vm443_vm6, %v844_v58, %v840_v56 }
 0x654   :  { %v1909_v59 = vsub.f32 %v1853_v62, %v845_v5 }
 0x656   :  { %v851_v60 = vand.u32 2139095040, %v1909_v59  ;;  %v848_v4 = vand.u32 2147483647, %v1909_v59  ;;  %vm850_vm10 = vcmp.lt.s32.totalorder %v1909_v59, 0 }
 0x658   :  { %v852_v61 = vshrl.u32 %v851_v60, 23  ;;  %v855_v9 = vand.u32 8388607, %v848_v4  ;;  %vm849_vm11 = vcmp.le.f32.partialorder %v848_v4, 0.7853982 }
 0x65a   :  { %v1511_v0 = vadd.s32 4294967169, %v852_v61  ;;  %v856_v23 = vor.u32 8388608, %v855_v9 }
 0x65c   :  { %v858_v3 = vadd.s32 1, %v1511_v0  ;;  %v896_v40 = vshll.u32 %v856_v23, 8 }
 0x65e   :  { %vm859_vm13 = vcmp.gt.s32.totalorder %v858_v3, 0 }
 0x65f   :  { %v860_v6 = vsel %vm859_vm13, %v858_v3, 0 }
 0x660   :  { %v862_v50 = vand.u32 31, %v860_v6  ;;  %v861_v54 = vshrl.u32 %v860_v6, 5 }
 0x662   :  { %v863_v10 = vsub.s32 32, %v862_v50  ;;  %v865_v11 = vshll.u32 %v1698_v16, %v862_v50  ;;  %v868_v62 = vshll.u32 %v1699_v18, %v862_v50  ;;  %v871_v1 = vshll.u32 %v1700_v20, %v862_v50 }
 0x663   :  { %v874_v15 = vshll.u32 %v1701_v22, %v862_v50  ;;  %v877_v19 = vshll.u32 %v1702_v24, %v862_v50  ;;  %vm880_vm14 = vcmp.lt.s32.totalorder %v861_v54, 1  ;;  %vm883_vm15 = vcmp.lt.s32.totalorder %v861_v54, 4 }
 0x664   :  { %v866_v12 = vshrl.u32 %v1699_v18, %v863_v10  ;;  %v869_v13 = vshrl.u32 %v1700_v20, %v863_v10  ;;  %v872_v14 = vshrl.u32 %v1701_v22, %v863_v10  ;;  %v875_v17 = vshrl.u32 %v1702_v24, %v863_v10 }
 0x665   :  { %v878_v21 = vshrl.u32 %v1703_v31, %v863_v10  ;;  %v864_v7 = vshrl.u32 %v1698_v16, %v863_v10  ;;  %vm882_vm0 = vcmp.lt.s32.totalorder %v861_v54, 3  ;;  %vm881_vm7 = vcmp.lt.s32.totalorder %v861_v54, 2 }
 0x666   :  { %v867_v25 = vor.u32 %v866_v12, %v865_v11  ;;  %v870_v26 = vor.u32 %v869_v13, %v868_v62  ;;  %v873_v27 = vor.u32 %v872_v14, %v871_v1  ;;  %v876_v28 = vor.u32 %v875_v17, %v874_v15 }
 0x667   :  { %v879_v29 = vor.u32 %v878_v21, %v877_v19 }
 0x668   :  { %v885_v30 = vsel %vm883_vm15, %v873_v27, 2102212464  ;;  %v888_v33 = vsel %vm880_vm14, %v867_v25, %v870_v26  ;;  %v892_v35 = vsel %vm880_vm14, %v870_v26, %v873_v27  ;;  %v889_v36 = vsel %vm883_vm15, %v876_v28, 920167782 }
 0x669   :  { %v893_v37 = vsel %vm883_vm15, %v879_v29, 1326507024  ;;  %v890_v38 = vsel %vm882_vm0, %v873_v27, %v889_v36  ;;  %v884_v41 = vsel %vm880_vm14, %v864_v7, %v867_v25  ;;  %v886_v8 = vsel %vm882_vm0, %v870_v26, %v885_v30 }
 0x66a   :  { %v894_v39 = vsel %vm882_vm0, %v876_v28, %v893_v37  ;;  %v891_v42 = vsel %vm881_vm7, %v888_v33, %v890_v38  ;;  %v887_v48 = vsel %vm881_vm7, %v884_v41, %v886_v8 }
 0x66b   :  { %v895_v43 = vsel %vm881_vm7, %v892_v35, %v894_v39  ;;  %v1929_v46 = vmul.u32.u64.low %v896_v40, %v891_v42  ;;  %v1930_v47 = vmul.u32.u64.high %v896_v40, %v891_v42, %v1929_v46  ;;  %v903_v51 = vmul.u32 %v896_v40, %v887_v48 }
 0x66c   :  { %v1926_v44 = vmul.u32.u64.low %v896_v40, %v895_v43  ;;  %v1927_v45 = vmul.u32.u64.high %v896_v40, %v895_v43, %v1926_v44 }
 0x66d   :  { %v906_v49 = vadd.s32 1, %v1930_v47 }
 0x66e   :  { %vm905_vm8 = vc.u32 %v1927_v45, %v1929_v46  ;;  %v904_v9 = vadd.s32 %v1929_v46, %v1927_v45 }
 0x66f   :  { %v907_v52 = vsel %vm905_vm8, %v906_v49, %v1930_v47  ;;  %vm940_vm8 = vweird.f32 %v1909_v59 }
 0x670   :  { %v908_v55 = vadd.s32 %v907_v52, %v903_v51 }
 0x672   :  { %v909_v56 = vadd.s32 536870912, %v908_v55 }
 0x674   :  { %v910_v58 = vshrl.u32 %v909_v56, 30 }
 0x676   :  { %v911_v5 = vshll.u32 %v910_v58, 30  ;;  %v934_v21 = vsub.s32 4, %v910_v58 }
 0x678   :  { %v912_v60 = vsub.s32 %v908_v55, %v911_v5  ;;  %v935_v26 = vsel %vm850_vm10, %v934_v21, %v910_v58 }
 0x679   :  { %v937_v28 = vsel %vm849_vm11, 0, %v935_v26 }
 0x67a   :  { %v914_v61 = vsub.s32 0, %v912_v60  ;;  %v1044_v29 = vadd.s32 3, %v937_v28  ;;  %v941_v30 = vand.u32 3, %v937_v28 }
 0x67c   :  { %v1512_v0 = vmin.u32 %v914_v61, %v912_v60  ;;  %v1045_v33 = vand.u32 3, %v1044_v29  ;;  %vm946_vm12 = vcmp.eq.s32.totalorder %v941_v30, 2  ;;  %vm943_vm14 = vcmp.eq.s32.totalorder %v941_v30, 0 }
 0x67d   :  { %vm942_vm0 = vcmp.lt.s32.totalorder %v941_v30, 2 }
 0x67e   :  { %v916_v3 = vclz %v1512_v0  ;;  %vm1050_vm13 = vcmp.eq.s32.totalorder %v1045_v33, 2  ;;  %vm1047_vm15 = vcmp.eq.s32.totalorder %v1045_v33, 0  ;;  %vm1046_vm7 = vcmp.lt.s32.totalorder %v1045_v33, 2 }
 0x680   :  { %v1513_v6 = vadd.s32 4294967294, %v916_v3 }
 0x682   :  { %vm1514_vm9 = vcmp.lt.s32.totalorder %v1513_v6, 0 }
 0x683   :  { %v919_v50 = vsel %vm1514_vm9, 0, %v1513_v6 }
 0x684   :  { %v920_v10 = vsub.s32 32, %v919_v50  ;;  %v924_v54 = vsub.s32 4294967266, %v919_v50  ;;  %v921_v11 = vshll.u32 %v912_v60, %v919_v50 }
 0x686   :  { %v922_v62 = vshrl.u32 %v904_v9, %v920_v10  ;;  %v925_v12 = vadd.s32 127, %v924_v54 }
 0x688   :  { %v923_v13 = vor.u32 %v922_v62, %v921_v11  ;;  %v926_v1 = vshll.u32 %v925_v12, 23 }
 0x68a   :  { %v927_v14 = vor.u32 4788187, %v926_v1  ;;  %v930_v17 = vcvt.s32.f32 %v923_v13 }
 0x68c   :  { %v928_v15 = vand.u32 2147483647, %v927_v14 }
 0x68e   :  { %v931_v19 = vmul.f32 %v930_v17, %v928_v15 }
 0x690   :  { %v932_v23 = vxor.u32 2147483648, %v931_v19 }
 0x692   :  { %v933_v25 = vsel %vm850_vm10, %v932_v23, %v931_v19 }
 0x693   :  { %v936_v27 = vsel %vm849_vm11, %v1909_v59, %v933_v25 }
 0x694   :  { %1614 = vcosq.f32 %v936_v27 }
 0x695   :  { %1616 = vsinq.f32 %v936_v27 }
 0x69e   :  { %v1615_v35 = vpop.eup %1614 }
 0x69f   :  { %v1617_v7 = vpop.eup %1616  ;;  %v947_v36 = vxor.u32 2147483648, %v1615_v35 }
 0x6a0   :  { %v944_v37 = vxor.u32 2147483648, %v1617_v7 }
 0x6a1   :  { %v1052_v38 = vsel %vm1050_vm13, %v947_v36, %v1617_v7  ;;  %v948_v4 = vsel %vm946_vm12, %v947_v36, %v1617_v7 }
 0x6a2   :  { %v1049_v39 = vsel %vm1047_vm15, %v1615_v35, %v944_v37  ;;  %v945_v40 = vsel %vm943_vm14, %v1615_v35, %v944_v37 }
 0x6a3   :  { %v1053_v41 = vsel %vm1046_vm7, %v1049_v39, %v1052_v38  ;;  %v949_v8 = vsel %vm942_vm0, %v945_v40, %v948_v4 }
 0x6a4   :  { %v1054_v42 = vsel %vm940_vm8, nan, %v1053_v41  ;;  %v950_v43 = vsel %vm940_vm8, nan, %v949_v8 }
 0x6a5   :  { %1060 = vrot.lane.b32.xlu1 %v1054_v42, %s1706_s0  ;;  %1056 = vst.msk [vmem:[#allocation5 + $0x4] sm:$0x3] %vm249_vm1, %v950_v43  ;;  %1058 = vst.msk [vmem:[#allocation6 + $0x4] sm:$0x3] %vm249_vm1, %v1054_v42 }
 0x717   :  { %v1061_v44 = vpop.permute.xlu1 %1060 }
 0x718   :  { %v1063_v45 = vsel %vm256_vm2, %v950_v43, %v1061_v44 }
 0x719   :  { %1556 = vmatmul.mubr.msk.f32.vlgmr.msra.gmra.mrb[2].mxu0 %vm258_vm3, %v1063_v45 }
 0x7ec   :  { %v1133_v46 = vpop.f32.mrb[2].mxu0 }
 0x7ed   :  { %v1144_v47 = vrot.slane %v1133_v46, %v1811_v53  ;;  %v1557_v48 = vpop.f32.mrb[3].mxu0  ;;  %v1210_v4 = vrot.slane %v1133_v46, 1 }
 0x7ef   :  { %v1145_v49 = vcombine.high %v1144_v47, %v1144_v47  ;;  %v1152_v51 = vrot.slane %v1144_v47, %v1811_v53 }
 0x7f1   :  { %v1163_v52 = vrot.slane %v1152_v51, %v1817_v57  ;;  %v1159_v55 = vrot.slane %v1145_v49, %v1811_v53 }
 0x7f3   :  { %1168 = vrot.lane.b32.xlu1 %v1163_v52, %s1708_s1  ;;  %v1167_v56 = vrot.slane %v1159_v55, %v1817_v57 }
 0x7f5   :  { %1170 = vrot.lane.b32.xlu0 %v1167_v56, %s1708_s1 }
 0x865   :  { %v1169_v58 = vpop.permute.xlu1 %1168 }
 0x866   :  { %v1174_v5 = vadd.f32 %v1169_v58, %v1828_v63 }
 0x867   :  { %v1171_v60 = vpop.permute.xlu0 %1170 }
 0x868   :  { %v1175_v61 = vadd.f32 %v1171_v60, %v1833_v2  ;;  %1178 = vrot.lane.b32.xlu1 %v1174_v5, %s1710_s16 }
 0x86a   :  { %1180 = vrot.lane.b32.xlu0 %v1175_v61, %s1710_s16 }
 0x8da   :  { %v1179_v0 = vpop.permute.xlu1 %1178 }
 0x8db   :  { %v1184_v3 = vmul.f32 %v1179_v0, %v1174_v5 }
 0x8dc   :  { %v1181_v6 = vpop.permute.xlu0 %1180 }
 0x8dd   :  { %v1186_v53 = vsel %vm381_vm4, %v1184_v3, 0.0  ;;  %v1185_v50 = vmul.f32 %v1181_v6, %v1175_v61  ;;  %1217 = vperm.xlu1 %1604, %v1184_v3  }
 0x8de   :  { %v1187_v57 = vrot.slane %v1186_v53, 4 }
 0x8df   :  { %v1193_v9 = vsel %vm381_vm4, %v1185_v50, 0.0  ;;  %1222 = vperm.xlu0 %1605, %v1185_v50  }
 0x8e0   :  { %v1188_v10 = vadd.f32 %v1187_v57, %v1186_v53  ;;  %v1194_v63 = vrot.slane %v1193_v9, 4 }
 0x8e2   :  { %v1189_v54 = vrot.slane %v1188_v10, 2  ;;  %v1195_v11 = vadd.f32 %v1194_v63, %v1193_v9 }
 0x8e4   :  { %v1190_v2 = vadd.f32 %v1189_v54, %v1188_v10  ;;  %v1196_v62 = vrot.slane %v1195_v11, 2 }
 0x8e6   :  { %v1197_v12 = vadd.f32 %v1196_v62, %v1195_v11  ;;  %v1191_v13 = vrot.slane %v1190_v2, 1 }
 0x8e8   :  { %v1192_v1 = vadd.f32 %v1191_v13, %v1190_v2  ;;  %v1198_v14 = vrot.slane %v1197_v12, 1 }
 0x8ea   :  { %1202 = vperm.xlu1 %1604, %v1192_v1   ;;  %v1199_v15 = vadd.f32 %v1198_v14, %v1197_v12 }
 0x8ec   :  { %1207 = vperm.xlu0 %1605, %v1199_v15  }
 0x95c   :  { %v1218_v17 = vpop.permute.xlu1 %1217 }
 0x95d   :  { %v1225_v19 = vmul.f32 %v1218_v17, %v1841_v32 }
 0x95e   :  { %v1223_v21 = vpop.permute.xlu0 %1222 }
 0x95f   :  { %v1227_v23 = vsel %vm423_vm5, %v1225_v19, 0.0  ;;  %v1226_v25 = vmul.f32 %v1223_v21, %v1843_v34 }
 0x960   :  { %v1228_v26 = vrot.slane %v1227_v23, 4 }
 0x961   :  { %v1234_v27 = vsel %vm423_vm5, %v1226_v25, 0.0 }
 0x962   :  { %v1229_v28 = vadd.f32 %v1228_v26, %v1227_v23  ;;  %v1235_v29 = vrot.slane %v1234_v27, 4 }
 0x964   :  { %v1230_v30 = vrot.slane %v1229_v28, 2  ;;  %v1236_v33 = vadd.f32 %v1235_v29, %v1234_v27 }
 0x966   :  { %v1231_v35 = vadd.f32 %v1230_v30, %v1229_v28  ;;  %v1237_v7 = vrot.slane %v1236_v33, 2 }
 0x968   :  { %v1238_v36 = vadd.f32 %v1237_v7, %v1236_v33  ;;  %v1232_v37 = vrot.slane %v1231_v35, 1 }
 0x969   :  { %v1203_v38 = vpop.permute.xlu1 %1202 }
 0x96a   :  { %v1239_v39 = vrot.slane %v1238_v36, 1  ;;  %v1233_v40 = vadd.f32 %v1232_v37, %v1231_v35  ;;  %v1213_v41 = vmul.f32 %v1203_v38, %v1133_v46 }
 0x96b   :  { %v1208_v32 = vpop.permute.xlu0 %1207 }
 0x96c   :  { %v1240_v8 = vadd.f32 %v1239_v39, %v1238_v36  ;;  %v1214_v42 = vmul.f32 %v1210_v4, %v1208_v32  ;;  %v1241_v43 = vadd.f32 %v1233_v40, %v1213_v41 }
 0x96e   :  { %v1242_v34 = vadd.f32 %v1240_v8, %v1214_v42 }
 0x970   :  { %v1245_v44 = vrot.slane %v1242_v34, 7 }
 0x972   :  { %v1246_v45 = vsel %vm443_vm6, %v1245_v44, %v1241_v43 }
 0x973   :  { %v1965_v47 = vsub.f32 %v1909_v59, %v1246_v45 }
 0x975   :  { %v1252_v48 = vand.u32 2139095040, %v1965_v47  ;;  %v1249_v55 = vand.u32 2147483647, %v1965_v47  ;;  %vm1251_vm11 = vcmp.lt.s32.totalorder %v1965_v47, 0 }
 0x977   :  { %v1253_v49 = vshrl.u32 %v1252_v48, 23  ;;  %v1256_v58 = vand.u32 8388607, %v1249_v55  ;;  %vm1250_vm12 = vcmp.le.f32.partialorder %v1249_v55, 0.7853982 }
 0x979   :  { %v1520_v51 = vadd.s32 4294967169, %v1253_v49  ;;  %v1257_v63 = vor.u32 8388608, %v1256_v58 }
 0x97b   :  { %v1259_v52 = vadd.s32 1, %v1520_v51 }
 0x97d   :  { %vm1260_vm2 = vcmp.gt.s32.totalorder %v1259_v52, 0 }
 0x97e   :  { %v1261_v56 = vsel %vm1260_vm2, %v1259_v52, 0  ;;  %vm1341_vm2 = vweird.f32 %v1965_v47 }
 0x97f   :  { %v1263_v46 = vand.u32 31, %v1261_v56  ;;  %v1262_v60 = vshrl.u32 %v1261_v56, 5 }
 0x981   :  { %v1264_v5 = vsub.s32 32, %v1263_v46  ;;  %v1266_v61 = vshll.u32 %v1698_v16, %v1263_v46  ;;  %v1269_v59 = vshll.u32 %v1699_v18, %v1263_v46  ;;  %v1272_v6 = vshll.u32 %v1700_v20, %v1263_v46 }
 0x982   :  { %v1275_v50 = vshll.u32 %v1701_v22, %v1263_v46  ;;  %v1278_v9 = vshll.u32 %v1702_v24, %v1263_v46  ;;  %vm1281_vm3 = vcmp.lt.s32.totalorder %v1262_v60, 1  ;;  %vm1284_vm4 = vcmp.lt.s32.totalorder %v1262_v60, 4 }
 0x983   :  { %v1267_v0 = vshrl.u32 %v1699_v18, %v1264_v5  ;;  %v1270_v3 = vshrl.u32 %v1700_v20, %v1264_v5  ;;  %v1273_v53 = vshrl.u32 %v1701_v22, %v1264_v5  ;;  %v1276_v57 = vshrl.u32 %v1702_v24, %v1264_v5 }
 0x984   :  { %v1279_v10 = vshrl.u32 %v1703_v31, %v1264_v5  ;;  %v1265_v1 = vshrl.u32 %v1698_v16, %v1264_v5  ;;  %vm1283_vm5 = vcmp.lt.s32.totalorder %v1262_v60, 3  ;;  %vm1282_vm6 = vcmp.lt.s32.totalorder %v1262_v60, 2 }
 0x985   :  { %v1268_v54 = vor.u32 %v1267_v0, %v1266_v61  ;;  %v1271_v11 = vor.u32 %v1270_v3, %v1269_v59  ;;  %v1274_v2 = vor.u32 %v1273_v53, %v1272_v6  ;;  %v1277_v62 = vor.u32 %v1276_v57, %v1275_v50 }
 0x986   :  { %v1280_v18 = vor.u32 %v1279_v10, %v1278_v9  ;;  %v1297_v31 = vshll.u32 %v1257_v63, 8 }
 0x987   :  { %v1286_v12 = vsel %vm1284_vm4, %v1274_v2, 2102212464  ;;  %v1289_v20 = vsel %vm1281_vm3, %v1268_v54, %v1271_v11  ;;  %v1293_v13 = vsel %vm1281_vm3, %v1271_v11, %v1274_v2  ;;  %v1290_v22 = vsel %vm1284_vm4, %v1277_v62, 920167782 }
 0x988   :  { %v1294_v14 = vsel %vm1284_vm4, %v1280_v18, 1326507024  ;;  %v1291_v24 = vsel %vm1283_vm5, %v1274_v2, %v1290_v22  ;;  %v1285_v17 = vsel %vm1281_vm3, %v1265_v1, %v1268_v54  ;;  %v1287_v19 = vsel %vm1283_vm5, %v1271_v11, %v1286_v12 }
 0x989   :  { %v1295_v15 = vsel %vm1283_vm5, %v1277_v62, %v1294_v14  ;;  %v1292_v21 = vsel %vm1282_vm6, %v1289_v20, %v1291_v24  ;;  %v1288_v29 = vsel %vm1282_vm6, %v1285_v17, %v1287_v19 }
 0x98a   :  { %v1296_v23 = vsel %vm1282_vm6, %v1293_v13, %v1295_v15  ;;  %v1985_v27 = vmul.u32.u64.low %v1297_v31, %v1292_v21  ;;  %v1986_v28 = vmul.u32.u64.high %v1297_v31, %v1292_v21, %v1985_v27  ;;  %v1304_v30 = vmul.u32 %v1297_v31, %v1288_v29 }
 0x98b   :  { %v1982_v25 = vmul.u32.u64.low %v1297_v31, %v1296_v23  ;;  %v1983_v26 = vmul.u32.u64.high %v1297_v31, %v1296_v23, %v1982_v25 }
 0x98c   :  { %v1307_v16 = vadd.s32 1, %v1986_v28 }
 0x98d   :  { %vm1306_vm9 = vc.u32 %v1983_v26, %v1985_v27  ;;  %v1305_v8 = vadd.s32 %v1985_v27, %v1983_v26 }
 0x98e   :  { %v1308_v33 = vsel %vm1306_vm9, %v1307_v16, %v1986_v28 }
 0x98f   :  { %v1309_v35 = vadd.s32 %v1308_v33, %v1304_v30 }
 0x991   :  { %v1310_v7 = vadd.s32 536870912, %v1309_v35 }
 0x993   :  { %v1311_v36 = vshrl.u32 %v1310_v7, 30 }
 0x995   :  { %v1312_v37 = vshll.u32 %v1311_v36, 30  ;;  %v1335_v58 = vsub.s32 4, %v1311_v36 }
 0x997   :  { %v1313_v38 = vsub.s32 %v1309_v35, %v1312_v37  ;;  %v1336_v61 = vsel %vm1251_vm11, %v1335_v58, %v1311_v36 }
 0x998   :  { %v1338_v0 = vsel %vm1250_vm12, 0, %v1336_v61 }
 0x999   :  { %v1315_v4 = vsub.s32 0, %v1313_v38  ;;  %v1447_v3 = vadd.s32 3, %v1338_v0  ;;  %v1342_v6 = vand.u32 3, %v1338_v0 }
 0x99b   :  { %v1521_v39 = vmin.u32 %v1315_v4, %v1313_v38  ;;  %v1448_v53 = vand.u32 3, %v1447_v3  ;;  %vm1347_vm13 = vcmp.eq.s32.totalorder %v1342_v6, 2  ;;  %vm1344_vm15 = vcmp.eq.s32.totalorder %v1342_v6, 0 }
 0x99c   :  { %vm1343_vm7 = vcmp.lt.s32.totalorder %v1342_v6, 2 }
 0x99d   :  { %v1317_v32 = vclz %v1521_v39  ;;  %vm1453_vm14 = vcmp.eq.s32.totalorder %v1448_v53, 2  ;;  %vm1450_vm0 = vcmp.eq.s32.totalorder %v1448_v53, 0  ;;  %vm1449_vm8 = vcmp.lt.s32.totalorder %v1448_v53, 2 }
 0x99f   :  { %v1522_v40 = vadd.s32 4294967294, %v1317_v32 }
 0x9a1   :  { %vm1523_vm10 = vcmp.lt.s32.totalorder %v1522_v40, 0 }
 0x9a2   :  { %v1320_v41 = vsel %vm1523_vm10, 0, %v1522_v40 }
 0x9a3   :  { %v1321_v42 = vsub.s32 32, %v1320_v41  ;;  %v1325_v34 = vsub.s32 4294967266, %v1320_v41  ;;  %v1322_v43 = vshll.u32 %v1313_v38, %v1320_v41 }
 0x9a5   :  { %v1323_v44 = vshrl.u32 %v1305_v8, %v1321_v42  ;;  %v1326_v45 = vadd.s32 127, %v1325_v34 }
 0x9a7   :  { %v1324_v48 = vor.u32 %v1323_v44, %v1322_v43  ;;  %v1327_v49 = vshll.u32 %v1326_v45, 23 }
 0x9a9   :  { %v1328_v51 = vor.u32 4788187, %v1327_v49  ;;  %v1331_v56 = vcvt.s32.f32 %v1324_v48 }
 0x9ab   :  { %v1329_v52 = vand.u32 2147483647, %v1328_v51 }
 0x9ad   :  { %v1332_v46 = vmul.f32 %v1331_v56, %v1329_v52 }
 0x9af   :  { %v1333_v5 = vxor.u32 2147483648, %v1332_v46 }
 0x9b1   :  { %v1334_v60 = vsel %vm1251_vm11, %v1333_v5, %v1332_v46 }
 0x9b2   :  { %v1337_v59 = vsel %vm1250_vm12, %v1965_v47, %v1334_v60 }
 0x9b3   :  { %1618 = vcosq.f32 %v1337_v59 }
 0x9b4   :  { %1620 = vsinq.f32 %v1337_v59 }
 0x9bd   :  { %v1619_v50 = vpop.eup %1618 }
 0x9be   :  { %v1621_v57 = vpop.eup %1620  ;;  %v1348_v9 = vxor.u32 2147483648, %v1619_v50 }
 0x9bf   :  { %v1345_v10 = vxor.u32 2147483648, %v1621_v57 }
 0x9c0   :  { %v1349_v55 = vsel %vm1347_vm13, %v1348_v9, %v1621_v57  ;;  %v1455_v63 = vsel %vm1453_vm14, %v1348_v9, %v1621_v57 }
 0x9c1   :  { %v1346_v54 = vsel %vm1344_vm15, %v1619_v50, %v1345_v10  ;;  %v1452_v11 = vsel %vm1450_vm0, %v1619_v50, %v1345_v10 }
 0x9c2   :  { %v1350_v2 = vsel %vm1343_vm7, %v1346_v54, %v1349_v55  ;;  %v1456_v62 = vsel %vm1449_vm8, %v1452_v11, %v1455_v63 }
 0x9c3   :  { %v1351_v18 = vsel %vm1341_vm2, nan, %v1350_v2  ;;  %v1457_v12 = vsel %vm1341_vm2, nan, %v1456_v62 }
 0x9c4   :  { %1353 = vst.msk [vmem:[#allocation5 + $0x6] sm:$0x3] %vm249_vm1, %v1351_v18  ;;  %1459 = vst.msk [vmem:[#allocation6 + $0x6] sm:$0x3] %vm249_vm1, %v1457_v12 }
 0x9c5   :  { %1655 = shalt.err (!%p1652_p12)
}
 0x9c6   :  { %s1656_s23 = scalar_lea.hbm %s2034_s4, 128 }
 0x9c7   :  { %p1657_p13 = scmp.ne.s32.totalorder %s2034_s4, %s1656_s23  ;;  %p1660_p0 = scmp.lt.u32.totalorder %s1656_s23, %s2034_s4 }
 0x9c9   :  { %p1662_p1 = pnand %p1660_p0, %p1657_p13 }
 0x9cb   :  { %1665 = shalt.err (!%p1662_p1)
}
 0x9cc   :  { %s1713_s28 = smov 32   ;;  %s1714_s29 = smov 2  }
 0x9cd   :  { %1471 = dma.vmem_to_hbm [thread:$0]  %s1466_s17, 128, %s2034_s4, [#allocation4], %s1713_s28, %s1713_s28, %s1714_s29  }
 0x9ce   :  { %s1666_s7 = scalar_lea.vmem %s1997_s19, 128  ;;  %p1671_p3 = scmp.lt.s32.totalorder %s1997_s19, %s1997_s19 }
 0x9cf   :  { %p1667_p2 = scmp.ne.s32.totalorder %s1997_s19, %s1666_s7  ;;  %p1672_p4 = scmp.lt.s32.totalorder %s1666_s7, %s1666_s7 }
 0x9d1   :  { %p1673_p5 = por %p1672_p4, %p1671_p3 }
 0x9d3   :  { %p1674_p6 = pnand %p1673_p5, %p1667_p2 }
 0x9d5   :  { %1677 = shalt.err (!%p1674_p6)
}
 0x9d6   :  { %s1678_s10 = scalar_lea.hbm %s2035_s5, 128 }
 0x9d7   :  { %p1679_p7 = scmp.ne.s32.totalorder %s2035_s5, %s1678_s10  ;;  %p1682_p8 = scmp.lt.u32.totalorder %s1678_s10, %s2035_s5 }
 0x9d9   :  { %p1684_p9 = pnand %p1682_p8, %p1679_p7 }
 0x9db   :  { %1687 = shalt.err (!%p1684_p9)
}
 0x9dc   :  { %1483 = dma.vmem_to_hbm [thread:$0]  %s1997_s19, 128, %s2035_s5, [#allocation7], %s1713_s28, %s1713_s28, %s1714_s29  }
 0x9dd   :  { %1690 = dma.done.wait [#allocation4], 128  }
 0x9de   :  { %1691 = vsyncadd [#allocation4], 4294967168 }
 0x9df   :  { %1692 = dma.done.wait [#allocation7], 128  }
 0x9e0   :  { %1693 = vsyncadd [#allocation7], 4294967168 }
 0x9e1   :  { %1490 = vsyncpa [#allocation3], 1 }
 0x9e2   :  { %1491 = vsyncpa [#allocation4], 1 }
 0x9e3   :  { %1492 = vsyncpa [#allocation7], 1 }

</bundles_post_ra>
